<compile_context>
chip_gen: v5e
topology: v5e:2x2
jax: 0.10.0
libtpu: 0.0.40
codegen_flags: <defaults>
</compile_context>

<pallas_src>
import jax
import jax.numpy as jnp
from jax.experimental import pallas as pl
from jax.experimental.pallas import tpu as pltpu  # noqa: F401  (TPU backend)

# ---- QLearner hyper-parameters (defaults from __init__) --------------------
GAMMA = 0.98                   # discount_factor_gamma
CONSERVATIVE_WEIGHT = 1.0      # conservative_reg_loss_weight
MIN_REWARD = 0.0               # min_reward
MONTE_CARLO_RETURN = -10000.0  # default(monte_carlo_return, -1e4)
NUM_TIMESTEPS = 1              # q_learn branch (single timestep)

# ---- problem sizes ----------------------------------------------------------
B = 16                # batch
C, F, H, W = 4, 2, 8, 8
D_TEXT = 32
D_FEAT = C * F * H * W + D_TEXT     # 544 (Mosaic pads the contraction dim)
A = 128               # num action bins


def _q_learner_kernel(feat_ref, next_ref, w_ref, w_ema_ref, b_ref, b_ema_ref,
                      act_ref, rew_ref, done_ref,
                      q_all_ref, misc_ref, scal_ref):
    nb, nbins = q_all_ref.shape

    # ---- online + EMA Q-head forwards: two N=128 MXU matmuls ----------------
    # bf16 operands (cast in-kernel, no wrapper materialization), f32 accumulation
    feat = feat_ref[...].astype(jnp.bfloat16)
    nxt = next_ref[...].astype(jnp.bfloat16)
    q_all = jnp.dot(feat, w_ref[...],
                    preferred_element_type=jnp.float32) + b_ref[...]        # [nb, A]
    q_next_all = jnp.dot(nxt, w_ema_ref[...],
                         preferred_element_type=jnp.float32) + b_ema_ref[...]

    actions = act_ref[...]          # [nb, 1] int32 (no float round-trip)
    reward = rew_ref[...]           # [nb, 1] f32
    done = done_ref[...]            # [nb, 1] f32 (1.0 where done)

    # ---- batch_select_indices (gather along action-bin axis via one-hot) ----
    bin_ids = jax.lax.broadcasted_iota(jnp.int32, (nb, nbins), 1)
    onehot = (bin_ids == actions).astype(jnp.float32)                       # [nb, A]
    q_pred = jnp.sum(q_all * onehot, axis=-1, keepdims=True)                # [nb, 1]

    # ---- q_next = amax(-1).clamp_(min=monte_carlo_return) -------------------
    q_next = jnp.max(q_next_all, axis=-1, keepdims=True)                    # [nb, 1]
    q_next = jnp.maximum(q_next, MONTE_CARLO_RETURN)
    q_next_value = jax.nn.sigmoid(q_next)                                   # use_bce_loss=False

    # ---- TD target + per-sample squared error --------------------------------
    not_terminal = 1.0 - done
    q_target = reward + not_terminal * (GAMMA * q_next_value)
    td_err = jax.nn.sigmoid(q_pred) - q_target
    td_sq = td_err * td_err                                                 # [nb, 1]

    # ---- conservative regularization (mask-free form) ------------------------
    # sum_a not_taken*(q-m)^2 == sum_a (q-m)^2 - (q_pred-m)^2
    m = MIN_REWARD * NUM_TIMESTEPS
    diff = q_all - m
    reg_per = (jnp.sum(diff * diff, axis=-1, keepdims=True)
               - (q_pred - m) * (q_pred - m))                               # [nb, 1]

    # ---- batch reductions folded into the kernel ------------------------------
    td_loss = jnp.sum(td_sq, axis=0, keepdims=True) / nb                    # (1,1)
    reg = jnp.sum(reg_per, axis=0, keepdims=True) / (nbins - 1)             # (1,1)
    loss = 0.5 * td_loss + 0.5 * CONSERVATIVE_WEIGHT * reg                  # (1,1)

    # ---- lane-dense packed outputs (concatenation, no where-chain) ------------
    q_all_ref[...] = q_all
    misc_ref[...] = jnp.concatenate(
        [q_pred, q_next, q_target,
         jnp.zeros((nb, misc_ref.shape[1] - 3), jnp.float32)], axis=1)       # [nb, 128]
    scal_ref[...] = jnp.concatenate(
        [td_loss, reg, loss,
         jnp.zeros((1, scal_ref.shape[1] - 3), jnp.float32)], axis=1)        # [1, 128]


@jax.jit
def q_learner_step(features, next_features, w_bf16, b, w_ema_bf16, b_ema,
                   actions, reward, done_f):
    """Single q_learn + learn step. Weights are pre-cast to bf16 outside the
    per-step path (hoisted to where the optimizer/EMA update runs)."""
    batch, d = features.shape
    nbins = w_bf16.shape[1]

    cost = pl.CostEstimate(
        flops=2 * 2 * batch * d * nbins,               # two [B,D]x[D,A] matmuls
        transcendentals=2 * batch,                     # sigmoids
        bytes_accessed=(2 * batch * d * 4              # f32 activations
                        + 2 * d * nbins * 2            # bf16 weights
                        + 2 * nbins * 4                # f32 biases
                        + batch * 12                   # actions/reward/done
                        + batch * nbins * 4            # q_all out
                        + batch * 128 * 4 + 128 * 4))  # misc + scalar out

    q_all, misc, scal = pl.pallas_call(
        _q_learner_kernel,
        out_shape=(
            jax.ShapeDtypeStruct((batch, nbins), jnp.float32),  # q_pred_all_actions
            jax.ShapeDtypeStruct((batch, 128), jnp.float32),    # lanes 0..2: q_pred/q_next/q_target
            jax.ShapeDtypeStruct((1, 128), jnp.float32),        # lanes 0..2: td_loss/reg/loss
        ),
        cost_estimate=cost,
    )(features, next_features, w_bf16, w_ema_bf16, b, b_ema,
      actions, reward, done_f)

    q_pred = misc[:, 0]
    q_next = misc[:, 1]
    q_target = misc[:, 2]
    td_loss = scal[0, 0]
    conservative_reg = scal[0, 1]
    loss = scal[0, 2]
    return loss, td_loss, conservative_reg, q_all, q_pred, q_next, q_target


def reference(features, next_features, w, b, w_ema, b_ema, actions, reward, done_f):
    """Pure-JAX f32 mirror of QLearner.q_learn + learn (conservative reg branch)."""
    q_all = features @ w + b
    q_next_all = next_features @ w_ema + b_ema
    q_pred = jnp.take_along_axis(q_all, actions, axis=-1)[:, 0]
    q_next = jnp.maximum(jnp.max(q_next_all, axis=-1), MONTE_CARLO_RETURN)
    q_next_value = jax.nn.sigmoid(q_next)
    not_terminal = 1.0 - done_f[:, 0]
    q_target = reward[:, 0] + not_terminal * (GAMMA * q_next_value)
    td_loss = jnp.mean((jax.nn.sigmoid(q_pred) - q_target) ** 2)
    onehot = jax.nn.one_hot(actions[:, 0], q_all.shape[-1], dtype=jnp.float32)
    reg = jnp.sum((1.0 - onehot) * (q_all - MIN_REWARD * NUM_TIMESTEPS) ** 2) / (
        q_all.shape[-1] - 1)
    loss = 0.5 * td_loss + 0.5 * reg * CONSERVATIVE_WEIGHT
    return loss, td_loss, reg, q_all


if __name__ == "__main__":
    key = jax.random.PRNGKey(0)
    ks = jax.random.split(key, 8)

    # layout: states / next_states are [B, C, F, H, W]  (PyTorch b c f h w)
    states = jax.random.normal(ks[0], (B, C, F, H, W), dtype=jnp.float32)
    next_states = jax.random.normal(ks[1], (B, C, F, H, W), dtype=jnp.float32)
    text_embeds = jax.random.normal(ks[2], (B, D_TEXT), dtype=jnp.float32)
    actions = jax.random.randint(ks[3], (B, 1), 0, A, dtype=jnp.int32)
    reward = jax.random.uniform(ks[4], (B, 1), dtype=jnp.float32)
    done_f = (jax.random.uniform(ks[5], (B, 1)) > 0.5).astype(jnp.float32)

    # deterministic synthetic Q-head weights (model + EMA model)
    w = jax.random.normal(ks[6], (D_FEAT, A), dtype=jnp.float32) / jnp.sqrt(D_FEAT)
    w_ema = jax.random.normal(ks[7], (D_FEAT, A), dtype=jnp.float32) / jnp.sqrt(D_FEAT)
    b = jnp.zeros((1, A), dtype=jnp.float32)
    b_ema = jnp.zeros((1, A), dtype=jnp.float32)

    # one-time bf16 weight cast (hoisted out of the per-step path)
    w_bf16 = w.astype(jnp.bfloat16)
    w_ema_bf16 = w_ema.astype(jnp.bfloat16)

    # flatten video + concat text embed -> model input features [B, D_FEAT]
    features = jnp.concatenate([states.reshape(B, -1), text_embeds], axis=-1)
    next_features = jnp.concatenate([next_states.reshape(B, -1), text_embeds], axis=-1)

    (loss, td_loss, reg, q_all, q_pred, q_next, q_target) = jax.block_until_ready(
        q_learner_step(features, next_features, w_bf16, b, w_ema_bf16, b_ema,
                       actions, reward, done_f))

    ref_loss, ref_td, ref_reg, ref_q_all = reference(
        features, next_features, w, b, w_ema, b_ema, actions, reward, done_f)

    # bf16 matmul inputs (f32 accumulation) -> loosened tolerances vs f32 ref
    assert jnp.allclose(loss, ref_loss, rtol=3e-2, atol=3e-2), (loss, ref_loss)
    assert jnp.allclose(td_loss, ref_td, rtol=3e-2, atol=3e-2), (td_loss, ref_td)
    assert jnp.allclose(reg, ref_reg, rtol=3e-2, atol=3e-2), (reg, ref_reg)
    assert jnp.allclose(q_all, ref_q_all, rtol=5e-2, atol=5e-2)
    assert q_all.shape == (B, A) and q_pred.shape == (B,)
    assert q_next.shape == (B,) and q_target.shape == (B,)

    print("KERNEL_OK")
</pallas_src>

<mosaic_0001>
module attributes {stable_mosaic.version = 11 : i64} {
  func.func @_q_learner_kernel(%arg0: memref<16x544xf32, #tpu.memory_space<vmem>>, %arg1: memref<16x544xf32, #tpu.memory_space<vmem>>, %arg2: memref<544x128xbf16, #tpu.memory_space<vmem>>, %arg3: memref<544x128xbf16, #tpu.memory_space<vmem>>, %arg4: memref<1x128xf32, #tpu.memory_space<vmem>>, %arg5: memref<1x128xf32, #tpu.memory_space<vmem>>, %arg6: memref<16x1xi32, #tpu.memory_space<vmem>>, %arg7: memref<16x1xf32, #tpu.memory_space<vmem>>, %arg8: memref<16x1xf32, #tpu.memory_space<vmem>>, %arg9: memref<16x128xf32, #tpu.memory_space<vmem>>, %arg10: memref<16x128xf32, #tpu.memory_space<vmem>>, %arg11: memref<1x128xf32, #tpu.memory_space<vmem>>) attributes {dimension_semantics = [], scalar_prefetch = 0 : i64, scratch_operands = 0 : i64, tpu.core_type = #tpu.core_type<tc>} {
    %c0 = arith.constant 0 : index
    %c0_0 = arith.constant 0 : index
    %0 = vector.load %arg0[%c0, %c0_0] : memref<16x544xf32, #tpu.memory_space<vmem>>, vector<16x544xf32>
    %1 = arith.truncf %0 : vector<16x544xf32> to vector<16x544xbf16>
    %c0_1 = arith.constant 0 : index
    %c0_2 = arith.constant 0 : index
    %2 = vector.load %arg1[%c0_1, %c0_2] : memref<16x544xf32, #tpu.memory_space<vmem>>, vector<16x544xf32>
    %3 = arith.truncf %2 : vector<16x544xf32> to vector<16x544xbf16>
    %c0_3 = arith.constant 0 : index
    %c0_4 = arith.constant 0 : index
    %4 = vector.load %arg2[%c0_3, %c0_4] : memref<544x128xbf16, #tpu.memory_space<vmem>>, vector<544x128xbf16>
    %cst = arith.constant dense<0.000000e+00> : vector<16x128xf32>
    %5 = tpu.matmul %1, %4, %cst {dimension_numbers = #tpu.dot_dimension_numbers<[1], [0], [0], [1], [0, 0, 1, 1], [], []>} : vector<16x544xbf16>, vector<544x128xbf16>, vector<16x128xf32> -> vector<16x128xf32>
    %c0_5 = arith.constant 0 : index
    %c0_6 = arith.constant 0 : index
    %6 = vector.load %arg4[%c0_5, %c0_6] : memref<1x128xf32, #tpu.memory_space<vmem>>, vector<1x128xf32>
    %7 = vector.broadcast %6 : vector<1x128xf32> to vector<16x128xf32>
    %8 = arith.addf %5, %7 : vector<16x128xf32>
    %c0_7 = arith.constant 0 : index
    %c0_8 = arith.constant 0 : index
    %9 = vector.load %arg3[%c0_7, %c0_8] : memref<544x128xbf16, #tpu.memory_space<vmem>>, vector<544x128xbf16>
    %cst_9 = arith.constant dense<0.000000e+00> : vector<16x128xf32>
    %10 = tpu.matmul %3, %9, %cst_9 {dimension_numbers = #tpu.dot_dimension_numbers<[1], [0], [0], [1], [0, 0, 1, 1], [], []>} : vector<16x544xbf16>, vector<544x128xbf16>, vector<16x128xf32> -> vector<16x128xf32>
    %c0_10 = arith.constant 0 : index
    %c0_11 = arith.constant 0 : index
    %11 = vector.load %arg5[%c0_10, %c0_11] : memref<1x128xf32, #tpu.memory_space<vmem>>, vector<1x128xf32>
    %12 = vector.broadcast %11 : vector<1x128xf32> to vector<16x128xf32>
    %13 = arith.addf %10, %12 : vector<16x128xf32>
    %c0_12 = arith.constant 0 : index
    %c0_13 = arith.constant 0 : index
    %14 = vector.load %arg6[%c0_12, %c0_13] : memref<16x1xi32, #tpu.memory_space<vmem>>, vector<16x1xi32>
    %c0_14 = arith.constant 0 : index
    %c0_15 = arith.constant 0 : index
    %15 = vector.load %arg7[%c0_14, %c0_15] : memref<16x1xf32, #tpu.memory_space<vmem>>, vector<16x1xf32>
    %c0_16 = arith.constant 0 : index
    %c0_17 = arith.constant 0 : index
    %16 = vector.load %arg8[%c0_16, %c0_17] : memref<16x1xf32, #tpu.memory_space<vmem>>, vector<16x1xf32>
    %17 = tpu.iota {dimensions = array<i32: 1>} : vector<16x128xi32>
    %18 = vector.broadcast %14 : vector<16x1xi32> to vector<16x128xi32>
    %19 = arith.cmpi eq, %17, %18 : vector<16x128xi32>
    %20 = arith.extui %19 : vector<16x128xi1> to vector<16x128xi32>
    %21 = arith.sitofp %20 : vector<16x128xi32> to vector<16x128xf32>
    %22 = arith.mulf %8, %21 : vector<16x128xf32>
    %cst_18 = arith.constant dense<0.000000e+00> : vector<16xf32>
    %23 = vector.multi_reduction <add>, %22, %cst_18 [1] : vector<16x128xf32> to vector<16xf32>
    %24 = vector.shape_cast %23 : vector<16xf32> to vector<16x1xf32>
    %cst_19 = arith.constant dense<0xFF800000> : vector<16xf32>
    %25 = vector.multi_reduction <maximumf>, %13, %cst_19 [1] : vector<16x128xf32> to vector<16xf32>
    %26 = vector.shape_cast %25 : vector<16xf32> to vector<16x1xf32>
    %cst_20 = arith.constant -1.000000e+04 : f32
    %27 = vector.broadcast %cst_20 : f32 to vector<16x1xf32>
    %28 = arith.maximumf %26, %27 : vector<16x1xf32>
    %29 = arith.negf %28 : vector<16x1xf32>
    %30 = math.exp %29 : vector<16x1xf32>
    %cst_21 = arith.constant 1.000000e+00 : f32
    %31 = vector.broadcast %cst_21 : f32 to vector<16x1xf32>
    %32 = arith.addf %31, %30 : vector<16x1xf32>
    %33 = arith.divf %31, %32 : vector<16x1xf32>
    %cst_22 = arith.constant 1.000000e+00 : f32
    %34 = vector.broadcast %cst_22 : f32 to vector<16x1xf32>
    %35 = arith.subf %34, %16 : vector<16x1xf32>
    %cst_23 = arith.constant 9.800000e-01 : f32
    %36 = vector.broadcast %cst_23 : f32 to vector<16x1xf32>
    %37 = arith.mulf %36, %33 : vector<16x1xf32>
    %38 = arith.mulf %35, %37 : vector<16x1xf32>
    %39 = arith.addf %15, %38 : vector<16x1xf32>
    %40 = arith.negf %24 : vector<16x1xf32>
    %41 = math.exp %40 : vector<16x1xf32>
    %cst_24 = arith.constant 1.000000e+00 : f32
    %42 = vector.broadcast %cst_24 : f32 to vector<16x1xf32>
    %43 = arith.addf %42, %41 : vector<16x1xf32>
    %44 = arith.divf %42, %43 : vector<16x1xf32>
    %45 = arith.subf %44, %39 : vector<16x1xf32>
    %46 = arith.mulf %45, %45 : vector<16x1xf32>
    %cst_25 = arith.constant 0.000000e+00 : f32
    %47 = vector.broadcast %cst_25 : f32 to vector<16x128xf32>
    %48 = arith.subf %8, %47 : vector<16x128xf32>
    %49 = arith.mulf %48, %48 : vector<16x128xf32>
    %cst_26 = arith.constant dense<0.000000e+00> : vector<16xf32>
    %50 = vector.multi_reduction <add>, %49, %cst_26 [1] : vector<16x128xf32> to vector<16xf32>
    %51 = vector.shape_cast %50 : vector<16xf32> to vector<16x1xf32>
    %cst_27 = arith.constant 0.000000e+00 : f32
    %52 = vector.broadcast %cst_27 : f32 to vector<16x1xf32>
    %53 = arith.subf %24, %52 : vector<16x1xf32>
    %cst_28 = arith.constant 0.000000e+00 : f32
    %54 = vector.broadcast %cst_28 : f32 to vector<16x1xf32>
    %55 = arith.subf %24, %54 : vector<16x1xf32>
    %56 = arith.mulf %53, %55 : vector<16x1xf32>
    %57 = arith.subf %51, %56 : vector<16x1xf32>
    %cst_29 = arith.constant dense<0.000000e+00> : vector<1xf32>
    %58 = vector.multi_reduction <add>, %46, %cst_29 [0] : vector<16x1xf32> to vector<1xf32>
    %59 = vector.shape_cast %58 : vector<1xf32> to vector<1x1xf32>
    %cst_30 = arith.constant 1.600000e+01 : f32
    %60 = vector.broadcast %cst_30 : f32 to vector<1x1xf32>
    %61 = arith.divf %59, %60 : vector<1x1xf32>
    %cst_31 = arith.constant dense<0.000000e+00> : vector<1xf32>
    %62 = vector.multi_reduction <add>, %57, %cst_31 [0] : vector<16x1xf32> to vector<1xf32>
    %63 = vector.shape_cast %62 : vector<1xf32> to vector<1x1xf32>
    %cst_32 = arith.constant 1.270000e+02 : f32
    %64 = vector.broadcast %cst_32 : f32 to vector<1x1xf32>
    %65 = arith.divf %63, %64 : vector<1x1xf32>
    %cst_33 = arith.constant 5.000000e-01 : f32
    %66 = vector.broadcast %cst_33 : f32 to vector<1x1xf32>
    %67 = arith.mulf %66, %61 : vector<1x1xf32>
    %cst_34 = arith.constant 5.000000e-01 : f32
    %68 = vector.broadcast %cst_34 : f32 to vector<1x1xf32>
    %69 = arith.mulf %68, %65 : vector<1x1xf32>
    %70 = arith.addf %67, %69 : vector<1x1xf32>
    %c0_35 = arith.constant 0 : index
    %c0_36 = arith.constant 0 : index
    %71 = vector.load %arg9[%c0_35, %c0_36] : memref<16x128xf32, #tpu.memory_space<vmem>>, vector<16x128xf32>
    tpu.vector_store %arg9[%c0_35, %c0_36], %8 {strides = array<i32>} : memref<16x128xf32, #tpu.memory_space<vmem>>, vector<16x128xf32>,
    %cst_37 = arith.constant 0.000000e+00 : f32
    %72 = vector.broadcast %cst_37 : f32 to vector<16x125xf32>
    %73 = tpu.concatenate %24, %28, %39, %72 in 1 : vector<16x1xf32>, vector<16x1xf32>, vector<16x1xf32>, vector<16x125xf32> -> vector<16x128xf32>
    %c0_38 = arith.constant 0 : index
    %c0_39 = arith.constant 0 : index
    %74 = vector.load %arg10[%c0_38, %c0_39] : memref<16x128xf32, #tpu.memory_space<vmem>>, vector<16x128xf32>
    tpu.vector_store %arg10[%c0_38, %c0_39], %73 {strides = array<i32>} : memref<16x128xf32, #tpu.memory_space<vmem>>, vector<16x128xf32>,
    %cst_40 = arith.constant 0.000000e+00 : f32
    %75 = vector.broadcast %cst_40 : f32 to vector<1x125xf32>
    %76 = tpu.concatenate %61, %65, %70, %75 in 1 : vector<1x1xf32>, vector<1x1xf32>, vector<1x1xf32>, vector<1x125xf32> -> vector<1x128xf32>
    %c0_41 = arith.constant 0 : index
    %c0_42 = arith.constant 0 : index
    %77 = vector.load %arg11[%c0_41, %c0_42] : memref<1x128xf32, #tpu.memory_space<vmem>>, vector<1x128xf32>
    tpu.vector_store %arg11[%c0_41, %c0_42], %76 {strides = array<i32>} : memref<1x128xf32, #tpu.memory_space<vmem>>, vector<1x128xf32>,
    return
  }
}

</mosaic_0001>

<bundles_post_ra>
// kernel: q_learner_step.1
= control target key start
LH: loop header
LB: loop body
LE: loop exit
PB: predicated region body
PF: predicated region fallthrough
CT: control target
= control target key end

     0   :  { %17 = vsyncpa [#allocation3], 0  ;;  %s1759_s0 = inlined_call_operand.hbm [shape: f32[16,544], index: 0, kind: input, shape index: {}]   ;;  %s1760_s1 = inlined_call_operand.hbm [shape: f32[16,544], index: 1, kind: input, shape index: {}]   ;;  %s1761_s2 = inlined_call_operand.hbm [shape: bf16[544,128], index: 2, kind: input, shape index: {}]   ;;  %s1762_s3 = inlined_call_operand.hbm [shape: bf16[544,128], index: 3, kind: input, shape index: {}]   ;;  %s1763_s4 = inlined_call_operand.vmem [shape: f32[1,128], index: 4, kind: input, shape index: {}]   ;;  %s1764_s5 = inlined_call_operand.vmem [shape: f32[1,128], index: 5, kind: input, shape index: {}]   ;;  %s1765_s6 = inlined_call_operand.vmem [shape: s32[16,1], index: 6, kind: input, shape index: {}]   ;;  %s1766_s7 = inlined_call_operand.vmem [shape: f32[16,1], index: 7, kind: input, shape index: {}]   ;;  %s1767_s8 = inlined_call_operand.vmem [shape: f32[16,1], index: 8, kind: input, shape index: {}]   ;;  %s1768_s9 = inlined_call_operand.hbm [shape: f32[16,128], index: 9, kind: output, shape index: {0}]   ;;  %s1769_s10 = inlined_call_operand.vmem [shape: f32[16,128], index: 10, kind: output, shape index: {1}]   ;;  %s1770_s11 = inlined_call_operand.vmem [shape: f32[1,128], index: 11, kind: output, shape index: {2}]  }
   0x1   :  { %18 = vsyncpa [#allocation6], 0 }
   0x2   :  { %19 = vsyncpa [#allocation9], 0 }
   0x3   :  { %20 = vsyncpa [#allocation4], 0  ;;  %s38_s19 = sshll.u32 %s1760_s1, 4  ;;  %s1567_s20 = smov [#allocation5]   ;;  %s39_s19 = int_to_ptr.hbm [resolvable:$true] %s38_s19 }
   0x4   :  { %s40_s21 = sshll.u32 %s1567_s20, 4  ;;  %s25_s24 = sshll.u32 %s1759_s0, 4  ;;  %s41_s21 = int_to_ptr.vmem [resolvable:$true] %s40_s21  ;;  %s26_s24 = int_to_ptr.hbm [resolvable:$true] %s25_s24 }
   0x5   :  { %s1568_s25 = smov 640   ;;  %s1569_s26 = smov 40  }
   0x6   :  { %46 = dma.hbm_to_vmem [thread:$0]  %s39_s19, 1280, %s41_s21, [#allocation6], %s1568_s25, %s1568_s25, %s1569_s26  }
   0x7   :  { %s1570_s27 = smov [#allocation2]   ;;  %s51_s12 = sshll.u32 %s1761_s2, 4  ;;  %s52_s12 = int_to_ptr.hbm [resolvable:$true] %s51_s12 }
   0x8   :  { %s27_s28 = sshll.u32 %s1570_s27, 4  ;;  %s1571_s1 = smov [#allocation7]   ;;  %s28_s28 = int_to_ptr.vmem [resolvable:$true] %s27_s28 }
   0x9   :  { %33 = dma.hbm_to_vmem [thread:$0]  %s26_s24, 1280, %s28_s28, [#allocation3], %s1568_s25, %s1568_s25, %s1569_s26  }
   0xa   :  { %s53_s13 = sshll.u32 %s1571_s1, 4  ;;  %s64_s0 = sshll.u32 %s1762_s3, 4  ;;  %s54_s13 = int_to_ptr.vmem [resolvable:$true] %s53_s13  ;;  %s65_s0 = int_to_ptr.hbm [resolvable:$true] %s64_s0 }
   0xb   :  { %s1572_s16 = smov 64   ;;  %s1573_s17 = smov 4  }
   0xc   :  { %59 = dma.hbm_to_vmem [thread:$0]  %s52_s12, 4352, %s54_s13, [#allocation6], %s1572_s16, %s1572_s16, %s1573_s17  }
   0xd   :  { %s1574_s18 = smov [#allocation8]  }
   0xe   :  { %s66_s19 = sshll.u32 %s1574_s18, 4  ;;  %s67_s19 = int_to_ptr.vmem [resolvable:$true] %s66_s19 }
   0xf   :  { %72 = dma.hbm_to_vmem [thread:$0]  %s65_s0, 4352, %s67_s19, [#allocation9], %s1572_s16, %s1572_s16, %s1573_s17  }
  0x10   :  { %1559 = dma.done.wait [#allocation3], 1280  }
  0x11   :  { %1560 = vsyncadd [#allocation3], 4294966016 }
  0x12   :  { %1561 = dma.done.wait [#allocation6], 5632  }
  0x13   :  { %1562 = vsyncadd [#allocation6], 4294961664 }
  0x14   :  { %1563 = dma.done.wait [#allocation9], 4352  }
  0x15   :  { %1564 = vsyncadd [#allocation9], 4294962944  ;;  %v1339_v0 = vld [vmem:[#allocation7 + $0x38] sm:$0xff]  ;;  %v1338_v4 = vld [vmem:[#allocation7 + $0x30] sm:$0xff]  ;;  %v1575_v42 = vmov 0   ;;  %vm406_vm0 = vcmask 261120  }
  0x16   :  { %v1347_v1 = vld [vmem:[#allocation7 + $0x78] sm:$0xff]  ;;  %410 = vmatpush.bf16.msra.mxu0 %v1339_v0  ;;  %v1346_v5 = vld [vmem:[#allocation7 + $0x70] sm:$0xff]  ;;  %v1337_v8 = vld [vmem:[#allocation7 + $0x28] sm:$0xff]  ;;  %1416 = vset.pattern.permute.xlu0 %v1575_v42  ;;  %v835_v42 = vlaneseq  ;;  %vm959_vm3 = vcmask 7168   ;;  %s1578_s29 = smov [#allocation10]   ;;  %s1580_s13 = smov 2  }
  0x17   :  { %v1355_v2 = vld [vmem:[#allocation7 + $0xb8] sm:$0xff]  ;;  %424 = vmatpush.bf16.msra.mxu1 %v1347_v1  ;;  %v1354_v6 = vld [vmem:[#allocation7 + $0xb0] sm:$0xff]  ;;  %v1345_v9 = vld [vmem:[#allocation7 + $0x68] sm:$0xff]  ;;  %s1027_s30 = sshll.u32 %s1578_s29, 4  ;;  %s1582_s14 = smov 8   ;;  %s1028_s30 = int_to_ptr.vmem [resolvable:$true] %s1027_s30 }
  0x18   :  { %v1363_v3 = vld [vmem:[#allocation7 + $0xf8] sm:$0xff]  ;;  %438 = vmatpush.bf16.msra.mxu2 %v1355_v2  ;;  %v1362_v7 = vld [vmem:[#allocation7 + $0xf0] sm:$0xff]  ;;  %v1353_v10 = vld [vmem:[#allocation7 + $0xa8] sm:$0xff] }
  0x19   :  { %452 = vmatpush.bf16.msra.mxu3 %v1363_v3  ;;  %v1361_v11 = vld [vmem:[#allocation7 + $0xe8] sm:$0xff]  ;;  %v1336_v12 = vld [vmem:[#allocation7 + $0x20] sm:$0xff]  ;;  %v1335_v16 = vld [vmem:[#allocation7 + $0x18] sm:$0xff] }
  0x1a   :  { %411 = vmatpush.bf16.msra.mxu0 %v1338_v4  ;;  %v1344_v13 = vld [vmem:[#allocation7 + $0x60] sm:$0xff]  ;;  %v1343_v17 = vld [vmem:[#allocation7 + $0x58] sm:$0xff]  ;;  %v1334_v20 = vld [vmem:[#allocation7 + $0x10] sm:$0xff] }
  0x1b   :  { %425 = vmatpush.bf16.msra.mxu1 %v1346_v5  ;;  %v1352_v14 = vld [vmem:[#allocation7 + $0xa0] sm:$0xff]  ;;  %v1351_v18 = vld [vmem:[#allocation7 + $0x98] sm:$0xff]  ;;  %v1342_v21 = vld [vmem:[#allocation7 + $0x50] sm:$0xff] }
  0x1c   :  { %439 = vmatpush.bf16.msra.mxu2 %v1354_v6  ;;  %v1360_v15 = vld [vmem:[#allocation7 + $0xe0] sm:$0xff]  ;;  %v1359_v19 = vld [vmem:[#allocation7 + $0xd8] sm:$0xff]  ;;  %v1350_v22 = vld [vmem:[#allocation7 + $0x90] sm:$0xff] }
  0x1d   :  { %453 = vmatpush.bf16.msra.mxu3 %v1362_v7  ;;  %v1358_v23 = vld [vmem:[#allocation7 + $0xd0] sm:$0xff]  ;;  %v1333_v24 = vld [vmem:[#allocation7 + $0x8] sm:$0xff]  ;;  %v1332_v28 = vld [vmem:[#allocation7] sm:$0xff] }
  0x1e   :  { %412 = vmatpush.bf16.msra.mxu0 %v1337_v8  ;;  %v1341_v25 = vld [vmem:[#allocation7 + $0x48] sm:$0xff]  ;;  %v1340_v29 = vld [vmem:[#allocation7 + $0x40] sm:$0xff]  ;;  %v102_v36 = vld [vmem:[#allocation2 + $0x10] sm:$0xff] }
  0x1f   :  { %426 = vmatpush.bf16.msra.mxu1 %v1345_v9  ;;  %v1349_v26 = vld [vmem:[#allocation7 + $0x88] sm:$0xff]  ;;  %v1348_v30 = vld [vmem:[#allocation7 + $0x80] sm:$0xff]  ;;  %v107_v37 = vld [vmem:[#allocation2 + $0x38] sm:$0xff] }
  0x20   :  { %440 = vmatpush.bf16.msra.mxu2 %v1353_v10  ;;  %v1357_v27 = vld [vmem:[#allocation7 + $0xc8] sm:$0xff]  ;;  %v1356_v31 = vld [vmem:[#allocation7 + $0xc0] sm:$0xff]  ;;  %v103_v38 = vld [vmem:[#allocation2 + $0x18] sm:$0xff]  ;;  %v112_v46 = vpack.c.bf16 %v107_v37, %v102_v36 }
  0x21   :  { %454 = vmatpush.bf16.msra.mxu3 %v1361_v11  ;;  %v1373_v32 = vld [vmem:[#allocation8 + $0x38] sm:$0xff]  ;;  %v100_v34 = vld [vmem:[#allocation2] sm:$0xff]  ;;  %v106_v41 = vld [vmem:[#allocation2 + $0x30] sm:$0xff] }
  0x22   :  { %413 = vmatpush.bf16.msra.mxu0 %v1336_v12  ;;  %v1381_v33 = vld [vmem:[#allocation8 + $0x78] sm:$0xff]  ;;  %v108_v39 = vld [vmem:[#allocation2 + $0x40] sm:$0xff]  ;;  %v1371_v55 = vld [vmem:[#allocation8 + $0x28] sm:$0xff] }
  0x23   :  { %427 = vmatpush.bf16.msra.mxu1 %v1344_v13  ;;  %v105_v35 = vld [vmem:[#allocation2 + $0x28] sm:$0xff]  ;;  %v113_v47 = vpack.c.bf16 %v108_v39, %v103_v38  ;;  %v1372_v49 = vld [vmem:[#allocation8 + $0x30] sm:$0xff]  ;;  %v1379_v56 = vld [vmem:[#allocation8 + $0x68] sm:$0xff] }
  0x24   :  { %441 = vmatpush.bf16.msra.mxu2 %v1352_v14  ;;  %v101_v40 = vld [vmem:[#allocation2 + $0x8] sm:$0xff]  ;;  %v110_v45 = vpack.c.bf16 %v105_v35, %v100_v34  ;;  %v1380_v50 = vld [vmem:[#allocation8 + $0x70] sm:$0xff]  ;;  %v1387_v57 = vld [vmem:[#allocation8 + $0xa8] sm:$0xff] }
  0x25   :  { %455 = vmatpush.bf16.msra.mxu3 %v1360_v15  ;;  %v1389_v43 = vld [vmem:[#allocation8 + $0xb8] sm:$0xff]  ;;  %v111_v48 = vpack.c.bf16 %v106_v41, %v101_v40  ;;  %v1388_v51 = vld [vmem:[#allocation8 + $0xb0] sm:$0xff]  ;;  %v1370_v59 = vld [vmem:[#allocation8 + $0x20] sm:$0xff] }
  0x26   :  { %414 = vmatpush.bf16.msra.mxu0 %v1335_v16  ;;  %v1365_v44 = vld [vmem:[#allocation7 + $0x108] sm:$0xff]  ;;  %v1364_v52 = vld [vmem:[#allocation7 + $0x100] sm:$0xff]  ;;  %v1378_v60 = vld [vmem:[#allocation8 + $0x60] sm:$0xff] }
  0x27   :  { %428 = vmatpush.bf16.msra.mxu1 %v1343_v17  ;;  %v1397_v53 = vld [vmem:[#allocation8 + $0xf8] sm:$0xff]  ;;  %v829_v54 = vld [vmem:[%s1765_s6] sm:$0xff]  ;;  %v1386_v61 = vld [vmem:[#allocation8 + $0xa0] sm:$0xff] }
  0x28   :  { %442 = vmatpush.bf16.msra.mxu2 %v1351_v18  ;;  %v1396_v58 = vld [vmem:[#allocation8 + $0xf0] sm:$0xff]  ;;  %838 = vperm.xlu0 %1416, %v829_v54   ;;  %v1395_v62 = vld [vmem:[#allocation8 + $0xe8] sm:$0xff]  ;;  %v109_v0 = vld [vmem:[#allocation2 + $0x48] sm:$0xff] }
  0x29   :  { %456 = vmatpush.bf16.msra.mxu3 %v1359_v19  ;;  %v104_v63 = vld [vmem:[#allocation2 + $0x20] sm:$0xff]  ;;  %v830_v1 = vld [vmem:[%s1765_s6 + $0x8] sm:$0xff]  ;;  %v1394_v6 = vld [vmem:[#allocation8 + $0xe0] sm:$0xff] }
  0x2a   :  { %415 = vmatpush.bf16.msra.mxu0 %v1334_v20  ;;  %v1369_v2 = vld [vmem:[#allocation8 + $0x18] sm:$0xff]  ;;  %v114_v5 = vpack.c.bf16 %v109_v0, %v104_v63  ;;  %v1368_v7 = vld [vmem:[#allocation8 + $0x10] sm:$0xff]  ;;  %v1367_v11 = vld [vmem:[#allocation8 + $0x8] sm:$0xff] }
  0x2b   :  { %429 = vmatpush.bf16.msra.mxu1 %v1342_v21  ;;  %v1377_v3 = vld [vmem:[#allocation8 + $0x58] sm:$0xff]  ;;  %v1376_v8 = vld [vmem:[#allocation8 + $0x50] sm:$0xff]  ;;  %v1375_v12 = vld [vmem:[#allocation8 + $0x48] sm:$0xff] }
  0x2c   :  { %443 = vmatpush.bf16.msra.mxu2 %v1350_v22  ;;  %v1385_v4 = vld [vmem:[#allocation8 + $0x98] sm:$0xff]  ;;  %v1384_v9 = vld [vmem:[#allocation8 + $0x90] sm:$0xff]  ;;  %v1383_v13 = vld [vmem:[#allocation8 + $0x88] sm:$0xff] }
  0x2d   :  { %457 = vmatpush.bf16.msra.mxu3 %v1358_v23  ;;  %v1393_v10 = vld [vmem:[#allocation8 + $0xd8] sm:$0xff]  ;;  %v1392_v14 = vld [vmem:[#allocation8 + $0xd0] sm:$0xff]  ;;  %v1366_v15 = vld [vmem:[#allocation8] sm:$0xff] }
  0x2e   :  { %416 = vmatpush.bf16.msra.mxu0 %v1333_v24  ;;  %v1374_v16 = vld [vmem:[#allocation8 + $0x40] sm:$0xff]  ;;  %v120_v19 = vld [vmem:[#allocation5 + $0x28] sm:$0xff]  ;;  %v121_v21 = vld [vmem:[#allocation5 + $0x30] sm:$0xff] }
  0x2f   :  { %430 = vmatpush.bf16.msra.mxu1 %v1341_v25  ;;  %v1382_v17 = vld [vmem:[#allocation8 + $0x80] sm:$0xff]  ;;  %v116_v20 = vld [vmem:[#allocation5 + $0x8] sm:$0xff]  ;;  %v117_v22 = vld [vmem:[#allocation5 + $0x10] sm:$0xff] }
  0x30   :  { %444 = vmatpush.bf16.msra.mxu2 %v1349_v26  ;;  %841 = vperm.xlu0 %1416, %v830_v1   ;;  %v115_v18 = vld [vmem:[#allocation5] sm:$0xff]  ;;  %v122_v23 = vld [vmem:[#allocation5 + $0x38] sm:$0xff]  ;;  %v1399_v24 = vld [vmem:[#allocation8 + $0x108] sm:$0xff] }
  0x31   :  { %458 = vmatpush.bf16.msra.mxu3 %v1357_v27  ;;  %v1391_v25 = vld [vmem:[#allocation8 + $0xc8] sm:$0xff]  ;;  %v125_v26 = vpack.c.bf16 %v120_v19, %v115_v18  ;;  %v126_v27 = vpack.c.bf16 %v121_v21, %v116_v20  ;;  %v119_v34 = vld [vmem:[#allocation5 + $0x20] sm:$0xff]  ;;  %v1417_v37 = vld [vmem:[%s1763_s4] ss:$0 sm:$0xff] }
  0x32   :  { %417 = vmatpush.bf16.msra.mxu0 %v1332_v28  ;;  %v127_v28 = vpack.c.bf16 %v122_v23, %v117_v22  ;;  %v124_v35 = vld [vmem:[#allocation5 + $0x48] sm:$0xff] }
  0x33   :  { %431 = vmatpush.bf16.msra.mxu1 %v1340_v29  ;;  %v1398_v29 = vld [vmem:[#allocation8 + $0x100] sm:$0xff]  ;;  %v129_v36 = vpack.c.bf16 %v124_v35, %v119_v34 }
  0x34   :  { %445 = vmatpush.bf16.msra.mxu2 %v1348_v30  ;;  %v1390_v30 = vld [vmem:[#allocation8 + $0xc0] sm:$0xff] }
  0x35   :  { %459 = vmatpush.bf16.msra.mxu3 %v1356_v31  ;;  %418 = vmatmul.bf16.vlgmr.msra.gmra.mxu0 %v110_v45  ;;  %v118_v31 = vld [vmem:[#allocation5 + $0x18] sm:$0xff] }
  0x36   :  { %472 = vmatpush.bf16.msrb.mxu0 %v1365_v44  ;;  %432 = vmatmul.bf16.vlgmr.msra.gmra.mxu1 %v111_v48 }
  0x37   :  { %759 = vmatpush.bf16.msrb.mxu1 %v1373_v32  ;;  %446 = vmatmul.bf16.vlgmr.msra.gmra.mxu2 %v112_v46  ;;  %v123_v32 = vld [vmem:[#allocation5 + $0x40] sm:$0xff] }
  0x38   :  { %773 = vmatpush.bf16.msrb.mxu2 %v1381_v33  ;;  %460 = vmatmul.bf16.vlgmr.msra.gmra.mxu3 %v113_v47  ;;  %v128_v33 = vpack.c.bf16 %v123_v32, %v118_v31  ;;  %v836_v47 = vand.u32 127, %v835_v42 }
  0x39   :  { %787 = vmatpush.bf16.msrb.mxu3 %v1389_v43 }
  0x3a   :  { %473 = vmatpush.bf16.msrb.mxu0 %v1364_v52 }
  0x3b   :  { %760 = vmatpush.bf16.msrb.mxu1 %v1372_v49 }
  0x3c   :  { %774 = vmatpush.bf16.msrb.mxu2 %v1380_v50 }
  0x3d   :  { %788 = vmatpush.bf16.msrb.mxu3 %v1388_v51 }
  0x3e   :  { %801 = vmatpush.bf16.msra.mxu0 %v1397_v53 }
  0x3f   :  { %761 = vmatpush.bf16.msrb.mxu1 %v1371_v55  ;;  %v1576_v55 = vmov 0.0  }
  0x40   :  { %775 = vmatpush.bf16.msrb.mxu2 %v1379_v56 }
  0x41   :  { %789 = vmatpush.bf16.msrb.mxu3 %v1387_v57 }
  0x42   :  { %802 = vmatpush.bf16.msra.mxu0 %v1396_v58 }
  0x43   :  { %762 = vmatpush.bf16.msrb.mxu1 %v1370_v59 }
  0x44   :  { %776 = vmatpush.bf16.msrb.mxu2 %v1378_v60 }
  0x45   :  { %790 = vmatpush.bf16.msrb.mxu3 %v1386_v61  ;;  %1188 = vmatmul.msk.bf16.vlgmr.msrb.gmra.mxu0 %vm406_vm0, %v114_v5  ;;  %v1418_v5 = vld [vmem:[%s1764_s5] ss:$0 sm:$0xff] }
  0x46   :  { %803 = vmatpush.bf16.msra.mxu0 %v1395_v62 }
  0x47   :  { %763 = vmatpush.bf16.msrb.mxu1 %v1369_v2 }
  0x48   :  { %777 = vmatpush.bf16.msrb.mxu2 %v1377_v3 }
  0x49   :  { %791 = vmatpush.bf16.msrb.mxu3 %v1385_v4 }
  0x4a   :  { %804 = vmatpush.bf16.msra.mxu0 %v1394_v6 }
  0x4b   :  { %764 = vmatpush.bf16.msrb.mxu1 %v1368_v7 }
  0x4c   :  { %778 = vmatpush.bf16.msrb.mxu2 %v1376_v8 }
  0x4d   :  { %792 = vmatpush.bf16.msrb.mxu3 %v1384_v9 }
  0x4e   :  { %805 = vmatpush.bf16.msra.mxu0 %v1393_v10 }
  0x4f   :  { %765 = vmatpush.bf16.msrb.mxu1 %v1367_v11 }
  0x50   :  { %779 = vmatpush.bf16.msrb.mxu2 %v1375_v12 }
  0x51   :  { %793 = vmatpush.bf16.msrb.mxu3 %v1383_v13 }
  0x52   :  { %806 = vmatpush.bf16.msra.mxu0 %v1392_v14 }
  0x53   :  { %766 = vmatpush.bf16.msrb.mxu1 %v1366_v15 }
  0x54   :  { %780 = vmatpush.bf16.msrb.mxu2 %v1374_v16 }
  0x55   :  { %794 = vmatpush.bf16.msrb.mxu3 %v1382_v17 }
  0x56   :  { %807 = vmatpush.bf16.msra.mxu0 %v1391_v25  ;;  %767 = vmatmul.bf16.vlgmr.msrb.gmra.mxu1 %v125_v26 }
  0x57   :  { %821 = vmatpush.bf16.msra.mxu1 %v1399_v24  ;;  %781 = vmatmul.bf16.vlgmr.msrb.gmra.mxu2 %v126_v27 }
  0x58   :  { %795 = vmatmul.bf16.vlgmr.msrb.gmra.mxu3 %v127_v28 }
  0x5a   :  { %808 = vmatpush.bf16.msra.mxu0 %v1390_v30 }
  0x5b   :  { %822 = vmatpush.bf16.msra.mxu1 %v1398_v29 }
  0x5d   :  { %809 = vmatmul.bf16.vlgmr.msra.gmra.mxu0 %v128_v33 }
  0x66   :  { %1325 = vmatmul.msk.bf16.vlgmr.msra.gmra.mxu1 %vm406_vm0, %v129_v36 }
  0x9a   :  { %v839_v45 = vpop.permute.xlu0 %838 }
  0x9b   :  { %vm843_vm1 = vcmp.eq.s32.totalorder %v836_v47, %v839_v45 }
  0x9c   :  { %v1326_v56 = vsel %vm843_vm1, 1.0, %v1576_v55 }
  0xa2   :  { %v842_v58 = vpop.permute.xlu0 %841 }
  0xa3   :  { %vm844_vm2 = vcmp.eq.s32.totalorder %v836_v47, %v842_v58  ;;  %v833_v58 = vld [vmem:[%s1767_s8] sm:$0xff] }
  0xa4   :  { %v1327_v0 = vsel %vm844_vm2, 1.0, %v1576_v55 }
  0xb2   :  { %v419_v38 = vpop.f32.mrf.mxu0 }
  0xb3   :  { %v420_v39 = vadd.f32 %v1417_v37, %v419_v38  ;;  %v433_v40 = vpop.f32.mrf.mxu1 }
  0xb5   :  { %v434_v41 = vadd.f32 %v433_v40, %v420_v39 }
  0xba   :  { %v447_v43 = vpop.f32.mrf.mxu2  ;;  %v421_v44 = vpop.f32.mrf.mxu0 }
  0xbb   :  { %v448_v46 = vadd.f32 %v447_v43, %v434_v41  ;;  %v461_v48 = vpop.f32.mrf.mxu3  ;;  %v422_v49 = vadd.f32 %v1417_v37, %v421_v44  ;;  %v435_v50 = vpop.f32.mrf.mxu1 }
  0xbd   :  { %v462_v51 = vadd.f32 %v461_v48, %v448_v46  ;;  %v436_v52 = vadd.f32 %v435_v50, %v422_v49 }
  0xc2   :  { %v449_v53 = vpop.f32.mrf.mxu2  ;;  %v475_v54 = vpop.f32.mrf.mxu0 }
  0xc3   :  { %v476_v57 = vadd.f32 %v475_v54, %v462_v51  ;;  %v450_v59 = vadd.f32 %v449_v53, %v436_v52  ;;  %v463_v62 = vpop.f32.mrf.mxu3 }
  0xc5   :  { %995 = vst [vmem:[#allocation10] sm:$0xff] %v476_v57  ;;  %v849_v60 = vmul.f32 %v1326_v56, %v476_v57  ;;  %v949_v61 = vmul.f32 %v476_v57, %v476_v57  ;;  %v464_v63 = vadd.f32 %v463_v62, %v450_v59 }
  0xc7   :  { %851 = vadd.xlane.f32.xlu2 %v849_v60  ;;  %951 = vadd.xlane.f32.xlu0 %v949_v61 }
  0xca   :  { %v477_v1 = vpop.f32.mrf.mxu0 }
  0xcb   :  { %v478_v2 = vadd.f32 %v477_v1, %v464_v63 }
  0xcd   :  { %996 = vst [vmem:[#allocation10 + $0x8] sm:$0xff] %v478_v2  ;;  %v850_v3 = vmul.f32 %v1327_v0, %v478_v2  ;;  %v950_v25 = vmul.f32 %v478_v2, %v478_v2 }
  0xcf   :  { %853 = vadd.xlane.f32.xlu2 %v850_v3 }
  0xd3   :  { %v768_v4 = vpop.f32.mrf.mxu1 }
  0xd4   :  { %v769_v6 = vadd.f32 %v1418_v5, %v768_v4 }
  0xda   :  { %v782_v7 = vpop.f32.mrf.mxu2  ;;  %v810_v12 = vpop.f32.mrf.mxu0 }
  0xdb   :  { %v783_v8 = vadd.f32 %v782_v7, %v769_v6  ;;  %v796_v9 = vpop.f32.mrf.mxu3  ;;  %v770_v10 = vpop.f32.mrf.mxu1 }
  0xdc   :  { %v771_v13 = vadd.f32 %v1418_v5, %v770_v10  ;;  %v899_v5 = vsub.f32 1.0, %v833_v58 }
  0xdd   :  { %v797_v11 = vadd.f32 %v796_v9, %v783_v8 }
  0xdf   :  { %v811_v14 = vadd.f32 %v810_v12, %v797_v11  ;;  %v831_v11 = vld [vmem:[%s1766_s7] sm:$0xff] }
  0xe2   :  { %v784_v15 = vpop.f32.mrf.mxu2  ;;  %v812_v21 = vpop.f32.mrf.mxu0 }
  0xe3   :  { %v785_v16 = vadd.f32 %v784_v15, %v771_v13  ;;  %v824_v17 = vpop.f32.mrf.mxu1  ;;  %v798_v19 = vpop.f32.mrf.mxu3 }
  0xe4   :  { %v825_v18 = vadd.f32 %v824_v17, %v811_v14 }
  0xe5   :  { %v799_v20 = vadd.f32 %v798_v19, %v785_v16 }
  0xe6   :  { %855 = vmax.xlane.f32.xlu1 %v825_v18 }
  0xe7   :  { %v813_v22 = vadd.f32 %v812_v21, %v799_v20  ;;  %v834_v20 = vld [vmem:[%s1767_s8 + $0x8] sm:$0xff]  ;;  %v1577_v21 = vmov 127.0   ;;  %s1029_s8 = sshll.u32 %s1768_s9, 4  ;;  %s1581_s9 = smov 128   ;;  %s1030_s8 = int_to_ptr.hbm [resolvable:$true] %s1029_s8 }
  0xe8   :  { %1035 = dma.vmem_to_hbm [thread:$0]  %s1028_s30, 256, %s1030_s8, [#allocation4], %s1581_s9, %s1581_s9, %s1582_s14  }
  0xeb   :  { %v826_v23 = vpop.f32.mrf.mxu1 }
  0xec   :  { %v827_v24 = vadd.f32 %v826_v23, %v813_v22 }
  0xee   :  { %857 = vmax.xlane.f32.xlu1 %v827_v24 }
  0xf6   :  { %953 = vadd.xlane.f32.xlu1 %v950_v25 }
 0x13a   :  { %v852_v26 = vpop.xlane.xlu2 %851  ;;  %v952_v59 = vpop.xlane.xlu0 %951 }
 0x13b   :  { %v1330_v27 = vmul.f32 -1.442695, %v852_v26  ;;  %v955_v57 = vmul.f32 %v852_v26, %v852_v26 }
 0x13d   :  { %1419 = vpow2.f32 %v1330_v27  ;;  %v957_v6 = vsub.f32 %v952_v59, %v955_v57 }
 0x142   :  { %v854_v28 = vpop.xlane.xlu2 %853 }
 0x143   :  { %v1331_v29 = vmul.f32 -1.442695, %v854_v28  ;;  %v1420_v34 = vpop.eup %1419  ;;  %v956_v63 = vmul.f32 %v854_v28, %v854_v28 }
 0x144   :  { %v1672_v35 = vadd.f32 1.0, %v1420_v34 }
 0x145   :  { %1421 = vpow2.f32 %v1331_v29  ;;  %v1579_v29 = vmov 16.0  }
 0x146   :  { %vm920_vm10 = vweird.f32 %v1672_v35  ;;  %v926_v19 = vand.u32 2147483648, %v1672_v35  ;;  %v924_v24 = vand.u32 2147483647, %v1672_v35 }
 0x148   :  { %vm925_vm0 = vcmp.eq.f32.partialorder %v924_v24, 8.507059e+37 }
 0x14b   :  { %v1422_v36 = vpop.eup %1421 }
 0x14c   :  { %v1675_v40 = vadd.f32 1.0, %v1422_v36 }
 0x14e   :  { %vm935_vm1 = vweird.f32 %v1675_v40 }
 0x159   :  { %v856_v30 = vpop.xlane.xlu1 %855 }
 0x15a   :  { %v859_v31 = vmax.f32 %v856_v30, -10000.0 }
 0x15c   :  { %v1328_v32 = vmul.f32 -1.442695, %v859_v31  ;;  %v1670_v33 = vsel %vm959_vm3, %v852_v26, %v859_v31  ;;  %v900_v31 = vsub.f32 1.0, %v834_v20 }
 0x15e   :  { %1423 = vpow2.f32 %v1328_v32 }
 0x15f   :  { %1425 = vrcp.f32 %v1672_v35 }
 0x161   :  { %v858_v37 = vpop.xlane.xlu1 %857 }
 0x162   :  { %v860_v38 = vmax.f32 %v858_v37, -10000.0  ;;  %v941_v37 = vand.u32 2147483648, %v1675_v40 }
 0x164   :  { %v1424_v39 = vpop.eup %1423  ;;  %v1329_v41 = vmul.f32 -1.442695, %v860_v38  ;;  %v1678_v42 = vsel %vm959_vm3, %v854_v28, %v860_v38 }
 0x165   :  { %v867_v43 = vadd.f32 1.0, %v1424_v39  ;;  %v1681_v44 = vpop.eup %1425  ;;  %v939_v39 = vand.u32 2147483647, %v1675_v40 }
 0x166   :  { %1427 = vpow2.f32 %v1329_v41  ;;  %v916_v48 = vmul.f32 %v1681_v44, %v1672_v35  ;;  %vm921_vm8 = vweird.f32 %v1681_v44  ;;  %v927_v35 = vor.u32 1.1754944e-38, %v926_v19 }
 0x167   :  { %1429 = vrcp.f32 %v867_v43  ;;  %v880_v52 = vand.u32 2147483648, %v867_v43  ;;  %v878_v56 = vand.u32 2147483647, %v867_v43  ;;  %vm874_vm5 = vweird.f32 %v867_v43  ;;  %vm1712_vm11 = vmor %vm920_vm10, %vm921_vm8 }
 0x168   :  { %1431 = vrcp.f32 %v1675_v40  ;;  %v917_v53 = vsub.f32 1.0, %v916_v48  ;;  %vm1010_vm8 = vcmask 23552  }
 0x169   :  { %v954_v60 = vpop.xlane.xlu1 %953  ;;  %v881_v0 = vor.u32 1.1754944e-38, %v880_v52  ;;  %vm879_vm7 = vcmp.eq.f32.partialorder %v878_v56, 8.507059e+37 }
 0x16a   :  { %v918_v1 = vmul.f32 %v1681_v44, %v917_v53  ;;  %v958_v7 = vsub.f32 %v954_v60, %v956_v63 }
 0x16c   :  { %v1428_v45 = vpop.eup %1427  ;;  %v919_v12 = vadd.f32 %v1681_v44, %v918_v1  ;;  %v977_v18 = vadd.f32 %v958_v7, %v957_v6 }
 0x16d   :  { %v1430_v46 = vpop.eup %1429  ;;  %v1683_v47 = vadd.f32 1.0, %v1428_v45 }
 0x16e   :  { %v1687_v49 = vpop.eup %1431  ;;  %v870_v50 = vmul.f32 %v1430_v46, %v867_v43  ;;  %vm875_vm4 = vweird.f32 %v1430_v46  ;;  %v923_v26 = vsel %vm1712_vm11, %v1681_v44, %v919_v12  ;;  %v978_v34 = vrot.slane %v977_v18, 4  ;;  %v832_v44 = vld [vmem:[%s1766_s7 + $0x8] sm:$0xff] }
 0x16f   :  { %1433 = vrcp.f32 %v1683_v47  ;;  %v931_v54 = vmul.f32 %v1687_v49, %v1675_v40  ;;  %vm876_vm6 = vmor %vm874_vm5, %vm875_vm4  ;;  %v895_v13 = vand.u32 2147483648, %v1683_v47  ;;  %v893_v17 = vand.u32 2147483647, %v1683_v47 }
 0x170   :  { %v871_v51 = vsub.f32 1.0, %v870_v50  ;;  %1435 = vrcp.f32 %v1577_v21  ;;  %vm889_vm12 = vweird.f32 %v1683_v47  ;;  %vm936_vm14 = vweird.f32 %v1687_v49 }
 0x171   :  { %v932_v2 = vsub.f32 1.0, %v931_v54  ;;  %v896_v28 = vor.u32 1.1754944e-38, %v895_v13  ;;  %1437 = vrcp.f32 %v1579_v29  ;;  %vm894_vm15 = vcmp.eq.f32.partialorder %v893_v17, 8.507059e+37  ;;  %vm937_vm2 = vmor %vm935_vm1, %vm936_vm14 }
 0x172   :  { %v872_v55 = vmul.f32 %v1430_v46, %v871_v51  ;;  %v928_v43 = vsel %vm925_vm0, %v927_v35, %v923_v26  ;;  %v979_v50 = vadd.f32 %v978_v34, %v977_v18  ;;  %v942_v51 = vor.u32 1.1754944e-38, %v941_v37 }
 0x173   :  { %v933_v14 = vmul.f32 %v1687_v49, %v932_v2  ;;  %vm940_vm4 = vcmp.eq.f32.partialorder %v939_v39, 8.507059e+37 }
 0x174   :  { %v873_v61 = vadd.f32 %v1430_v46, %v872_v55  ;;  %v980_v57 = vrot.slane %v979_v50, 2 }
 0x175   :  { %v1434_v62 = vpop.eup %1433  ;;  %v934_v32 = vadd.f32 %v1687_v49, %v933_v14 }
 0x176   :  { %v885_v3 = vmul.f32 %v1434_v62, %v1683_v47  ;;  %v877_v4 = vsel %vm876_vm6, %v1430_v46, %v873_v61  ;;  %vm890_vm9 = vweird.f32 %v1434_v62  ;;  %v1436_v41 = vpop.eup %1435 }
 0x177   :  { %v882_v8 = vsel %vm879_vm7, %v881_v0, %v877_v4  ;;  %vm1725_vm13 = vmor %vm889_vm12, %vm890_vm9  ;;  %v938_v47 = vsel %vm937_vm2, %v1687_v49, %v934_v32  ;;  %v1438_v48 = vpop.eup %1437  ;;  %v985_v53 = vmul.f32 127.0, %v1436_v41  ;;  %vm989_vm5 = vweird.f32 %v1436_v41 }
 0x178   :  { %v886_v9 = vsub.f32 1.0, %v885_v3  ;;  %v901_v10 = vmul.f32 0.98, %v882_v8  ;;  %v943_v40 = vsel %vm940_vm4, %v942_v51, %v938_v47  ;;  %v970_v56 = vmul.f32 16.0, %v1438_v48 }
 0x179   :  { %v986_v59 = vsub.f32 1.0, %v985_v53  ;;  %vm974_vm6 = vweird.f32 %v1438_v48  ;;  %vm1007_vm7 = vcmask 15360  }
 0x17a   :  { %v903_v15 = vmul.f32 %v901_v10, %v899_v5  ;;  %v887_v16 = vmul.f32 %v1434_v62, %v886_v9  ;;  %v971_v49 = vsub.f32 1.0, %v970_v56 }
 0x17b   :  { %v987_v0 = vmul.f32 %v1436_v41, %v986_v59 }
 0x17c   :  { %v905_v22 = vadd.f32 %v903_v15, %v831_v11  ;;  %v888_v25 = vadd.f32 %v1434_v62, %v887_v16  ;;  %v972_v2 = vmul.f32 %v1438_v48, %v971_v49 }
 0x17d   :  { %v988_v5 = vadd.f32 %v1436_v41, %v987_v0 }
 0x17e   :  { %999 = vrot.lane.b32.xlu2 %v905_v22, %s1580_s13  ;;  %v892_v30 = vsel %vm1725_vm13, %v1434_v62, %v888_v25  ;;  %v945_v45 = vsub.f32 %v928_v43, %v905_v22  ;;  %v981_v62 = vadd.f32 %v980_v57, %v979_v50  ;;  %v973_v7 = vadd.f32 %v1438_v48, %v972_v2 }
 0x17f   :  { %v897_v36 = vsel %vm894_vm15, %v896_v28, %v892_v30  ;;  %v990_v10 = vsel %vm989_vm5, %v1436_v41, %v988_v5 }
 0x180   :  { %v902_v38 = vmul.f32 0.98, %v897_v36  ;;  %v947_v54 = vmul.f32 %v945_v45, %v945_v45  ;;  %v982_v3 = vrot.slane %v981_v62, 1  ;;  %v975_v12 = vsel %vm974_vm6, %v1438_v48, %v973_v7 }
 0x182   :  { %v904_v46 = vmul.f32 %v902_v38, %v900_v31  ;;  %v960_v60 = vsel %vm959_vm3, %v947_v54, 0.0  ;;  %v983_v8 = vadd.f32 %v982_v3, %v981_v62 }
 0x184   :  { %v906_v52 = vadd.f32 %v904_v46, %v832_v44  ;;  %v991_v14 = vmul.f32 %v990_v10, %v983_v8 }
 0x186   :  { %1001 = vrot.lane.b32.xlu1 %v906_v52, %s1580_s13  ;;  %v946_v55 = vsub.f32 %v943_v40, %v906_v52  ;;  %v993_v17 = vmul.f32 0.5, %v991_v14 }
 0x188   :  { %v948_v58 = vmul.f32 %v946_v55, %v946_v55 }
 0x18a   :  { %v961_v61 = vsel %vm959_vm3, %v948_v58, 0.0 }
 0x18b   :  { %v962_v63 = vadd.f32 %v961_v61, %v960_v60 }
 0x18d   :  { %v963_v1 = vrot.slane %v962_v63, 4 }
 0x18f   :  { %v964_v4 = vadd.f32 %v963_v1, %v962_v63 }
 0x191   :  { %v965_v6 = vrot.slane %v964_v4, 2 }
 0x193   :  { %v966_v9 = vadd.f32 %v965_v6, %v964_v4 }
 0x195   :  { %v967_v11 = vrot.slane %v966_v9, 1 }
 0x197   :  { %v968_v13 = vadd.f32 %v967_v11, %v966_v9 }
 0x199   :  { %v976_v15 = vmul.f32 %v975_v12, %v968_v13 }
 0x19b   :  { %v992_v16 = vmul.f32 0.5, %v976_v15  ;;  %v1019_v18 = vsel %vm959_vm3, %v976_v15, %v991_v14 }
 0x19d   :  { %v994_v19 = vadd.f32 %v993_v17, %v992_v16 }
 0x19f   :  { %1016 = vrot.lane.b32.xlu2 %v994_v19, %s1580_s13 }
 0x1d8   :  { %v1000_v20 = vpop.permute.xlu2 %999 }
 0x1d9   :  { %v1008_v21 = vsel %vm1007_vm7, %v1670_v33, %v1000_v20 }
 0x1da   :  { %v1011_v22 = vsel %vm1010_vm8, %v1008_v21, 0.0 }
 0x1db   :  { %1013 = vst [vmem:[%s1769_s10] sm:$0xff] %v1011_v22 }
 0x1f8   :  { %v1002_v23 = vpop.permute.xlu1 %1001 }
 0x1f9   :  { %v1009_v24 = vsel %vm1007_vm7, %v1678_v42, %v1002_v23  ;;  %v1017_v25 = vpop.permute.xlu2 %1016 }
 0x1fa   :  { %v1012_v26 = vsel %vm1010_vm8, %v1009_v24, 0.0  ;;  %v1020_v27 = vsel %vm1007_vm7, %v1019_v18, %v1017_v25 }
 0x1fb   :  { %1014 = vst [vmem:[%s1769_s10 + $0x8] sm:$0xff] %v1012_v26  ;;  %v1021_v28 = vsel %vm1010_vm8, %v1020_v27, 0.0 }
 0x1fc   :  { %1022 = vst [vmem:[%s1770_s11] sm:$0x1] %v1021_v28 }
 0x1fd   :  { %1565 = dma.done.wait [#allocation4], 256  }
 0x1fe   :  { %1566 = vsyncadd [#allocation4], 4294967040 }
 0x1ff   :  { %1048 = vsyncpa [#allocation3], 1 }
 0x200   :  { %1049 = vsyncpa [#allocation6], 1 }
 0x201   :  { %1050 = vsyncpa [#allocation9], 1 }
 0x202   :  { %1051 = vsyncpa [#allocation4], 1 }

</bundles_post_ra>
